<compile_context>
chip_gen: v6e
topology: v6e:2x2x1
jax: 0.10.0
libtpu: 0.0.40
codegen_flags: <defaults>
</compile_context>

<pallas_src>
import jax
import jax.numpy as jnp
from jax.experimental import pallas as pl
from jax.experimental.pallas import tpu as pltpu

_LANE = 128
_DEFAULT_TB = 4096            # f32-safe on v5e's 16 MiB default scoped VMEM
_MIN_SPLIT_B = 1024           # below this, launch latency dominates; 1 block is fine
_VMEM_LIMIT_BYTES = 32 * 1024 * 1024   # <= v7x default scoped; lifts v5e/v6e's 16 MiB


def _round_up(n, m):
    return ((n + m - 1) // m) * m


def qnet_kernel(x_ref, w1_ref, b1_ref, w2_ref, b2_ref, o_ref):
    # x block: (TB, S) in the caller's dtype (f32 or bf16). Upcast once so bf16
    # callers get halved HBM streaming while keeping f32 MXU accumulation.
    x = x_ref[...].astype(jnp.float32)
    # fc1: (TB, S) @ (S, Hp) + (1, Hp) -> relu
    h = jnp.dot(x, w1_ref[...], preferred_element_type=jnp.float32)
    h = jnp.maximum(h + b1_ref[...], 0.0)
    # Lane-dense epilogue: transpose h ((TB,Hp)->(Hp,TB), fully (8,128)-aligned,
    # XLU slot otherwise idle) and compute out^T = W2(A,Hp) @ h^T(Hp,TB) so the
    # store's minor dim is TB -> unmasked vst and a tiny (A,TB) out DMA buffer.
    h_t = h.T
    out_t = jnp.dot(w2_ref[...], h_t, preferred_element_type=jnp.float32)
    o_ref[...] = (out_t + b2_ref[...]).astype(o_ref.dtype)


def prepare_params(w1, b1, w2, b2):
    """One-time (init-time) layout prep from the PyTorch Linear layout:
       w1: (H, S), b1: (H,), w2: (A, H), b2: (A,).
    Returns (w1_t, b1_p, w2_p, b2_p): hidden dim zero-padded to a multiple of
    128 lanes; w1 pre-transposed to (S, Hp); w2 kept in (A, Hp) form (no
    transpose needed for the out^T formulation); b2 as a (A, 1) column."""
    H, S = w1.shape
    A = w2.shape[0]
    Hp = _round_up(H, _LANE)

    w1_t = jnp.zeros((S, Hp), jnp.float32).at[:, :H].set(jnp.asarray(w1, jnp.float32).T)
    b1_p = jnp.zeros((1, Hp), jnp.float32).at[:, :H].set(jnp.asarray(b1, jnp.float32))
    w2_p = jnp.zeros((A, Hp), jnp.float32).at[:, :H].set(jnp.asarray(w2, jnp.float32))
    b2_p = jnp.asarray(b2, jnp.float32).reshape(A, 1)
    return w1_t, b1_p, w2_p, b2_p


def _pick_batch_tile(B, tb):
    """Pick the batch tile:
       * big enough to amortize the ~0.35us/step pipeline overhead,
       * a multiple of 128 whenever we tile (keeps the (TB,S) x block and the
         (A,TB) transposed output block (8,128)-legal for any B),
       * >=2 grid blocks for large B so v7x's two TensorCores both get work."""
    tb = max(_LANE, _round_up(tb, _LANE))
    if B < _MIN_SPLIT_B and B <= tb:
        return B                       # single full-dim block (always layout-legal)
    return min(tb, _round_up(pl.cdiv(B, 2), _LANE))


def _resident_spec(shape):
    """Weights/biases: constant index_map; single VMEM buffer, never re-copied."""
    try:
        return pl.BlockSpec(shape, lambda i: (0, 0), pipeline_mode=pl.Buffered(1))
    except TypeError:  # very old BlockSpec signature without pipeline_mode
        return pl.BlockSpec(shape, lambda i: (0, 0))


def qnet_forward_qT(x, params, *, tb=_DEFAULT_TB):
    """x: (B, S) f32 or bf16. Returns Q^T with shape (A, B) f32 (lane-dense
    along batch). Use this directly when the consumer can work action-major
    (e.g. greedy action = argmax over axis 0)."""
    w1_t, b1_p, w2_p, b2_p = params
    B, S = x.shape
    Hp = w1_t.shape[1]
    A = w2_p.shape[0]
    assert w1_t.shape[0] == S, "feature dim mismatch between x and params"

    TB = _pick_batch_tile(B, tb)
    grid = (pl.cdiv(B, TB),)

    param_bytes = sum(int(p.size) * p.dtype.itemsize for p in params)
    cost = pl.CostEstimate(
        flops=2 * B * (S * Hp + Hp * A),
        transcendentals=0,
        bytes_accessed=B * S * x.dtype.itemsize + B * A * 4 + param_bytes,
    )

    return pl.pallas_call(
        qnet_kernel,
        out_shape=jax.ShapeDtypeStruct((A, B), jnp.float32),
        grid=grid,
        in_specs=[
            pl.BlockSpec((TB, S), lambda i: (i, 0)),   # x: streamed per batch tile
            _resident_spec((S, Hp)),                   # w1^T (padded hidden)
            _resident_spec((1, Hp)),                   # b1
            _resident_spec((A, Hp)),                   # w2 (PyTorch layout, padded)
            _resident_spec((A, 1)),                    # b2 column
        ],
        out_specs=pl.BlockSpec((A, TB), lambda i: (0, i)),
        compiler_params=pltpu.CompilerParams(
            dimension_semantics=("parallel",),         # shard batch across TCs on v7x
            vmem_limit_bytes=_VMEM_LIMIT_BYTES,
        ),
        cost_estimate=cost,
    )(x, w1_t, b1_p, w2_p, b2_p)


def qnet_forward(x, params, *, tb=_DEFAULT_TB):
    """Returns (B, A) f32 Q-values, matching the PyTorch module's layout.
    The (A,B)->(B,A) transpose is a tiny XLA op done once in the wrapper."""
    return qnet_forward_qT(x, params, tb=tb).T


def init_params(key, state_dim, hidden_dim, action_dim):
    """Deterministic init mimicking torch.nn.Linear default (uniform +/- 1/sqrt(fan_in))."""
    k1, k2, k3, k4 = jax.random.split(key, 4)
    bound1 = 1.0 / (state_dim ** 0.5)
    bound2 = 1.0 / (hidden_dim ** 0.5)
    w1 = jax.random.uniform(k1, (hidden_dim, state_dim), jnp.float32, -bound1, bound1)
    b1 = jax.random.uniform(k2, (hidden_dim,), jnp.float32, -bound1, bound1)
    w2 = jax.random.uniform(k3, (action_dim, hidden_dim), jnp.float32, -bound2, bound2)
    b2 = jax.random.uniform(k4, (action_dim,), jnp.float32, -bound2, bound2)
    return w1, b1, w2, b2


def qnet_reference(x, w1, b1, w2, b2):
    h = jnp.maximum(x @ w1.T + b1, 0.0)
    return h @ w2.T + b2


if __name__ == "__main__":
    # Module-consistent small dims: state_dim=4, hidden_dim=32, action_dim=2.
    S, H, A = 4, 32, 2

    key = jax.random.PRNGKey(0)
    kx_small, kx_big, kp = jax.random.split(key, 3)

    w1, b1, w2, b2 = init_params(kp, S, H, A)
    params = prepare_params(w1, b1, w2, b2)   # one-time layout prep (not per call)

    # 1) Small batch (single block, TB == B): matches the original DQN usage.
    x_small = jax.random.normal(kx_small, (8, S), jnp.float32)
    out_small = jax.block_until_ready(qnet_forward(x_small, params))
    ref_small = qnet_reference(x_small, w1, b1, w2, b2)
    assert out_small.shape == (8, A)
    assert jnp.allclose(out_small, ref_small, atol=1e-5, rtol=1e-5), "small-batch mismatch"

    # 2) Larger batch exercising the pipelined multi-block grid (2 x 2048-row tiles,
    #    also the >=2-block path that keeps both v7x TensorCores busy).
    x_big = jax.random.normal(kx_big, (4096, S), jnp.float32)
    out_big = jax.block_until_ready(qnet_forward(x_big, params))
    ref_big = qnet_reference(x_big, w1, b1, w2, b2)
    assert out_big.shape == (4096, A)
    assert jnp.allclose(out_big, ref_big, atol=1e-5, rtol=1e-5), "big-batch mismatch"

    # 3) bf16-streamed x (halves HBM bytes on the bandwidth-bound input path);
    #    kernel upcasts and accumulates in f32.
    x_bf16 = x_big.astype(jnp.bfloat16)
    out_bf16 = jax.block_until_ready(qnet_forward(x_bf16, params))
    ref_bf16 = qnet_reference(x_bf16.astype(jnp.float32), w1, b1, w2, b2)
    assert jnp.allclose(out_bf16, ref_bf16, atol=1e-3, rtol=1e-3), "bf16-stream mismatch"

    # 4) Lane-dense (A, B) output path used directly (no wrapper transpose).
    out_t = jax.block_until_ready(qnet_forward_qT(x_big, params))
    assert out_t.shape == (A, 4096)
    assert jnp.allclose(out_t.T, ref_big, atol=1e-5, rtol=1e-5), "qT-path mismatch"

    print("KERNEL_OK")
</pallas_src>

<mosaic_0001>
module attributes {stable_mosaic.version = 11 : i64} {
  func.func @qnet_kernel(%arg0: i32, %arg1: memref<8x4xf32, #tpu.memory_space<vmem>>, %arg2: memref<4x128xf32, #tpu.memory_space<vmem>>, %arg3: memref<1x128xf32, #tpu.memory_space<vmem>>, %arg4: memref<2x128xf32, #tpu.memory_space<vmem>>, %arg5: memref<2x1xf32, #tpu.memory_space<vmem>>, %arg6: memref<2x8xf32, #tpu.memory_space<vmem>>) attributes {dimension_semantics = [#tpu.dimension_semantics<parallel>], iteration_bounds = array<i64: 1>, scalar_prefetch = 0 : i64, scratch_operands = 0 : i64, tpu.core_type = #tpu.core_type<tc>, window_params = [{transform_indices = @transform_0, window_bounds = array<i64: 8, 4>}, {pipeline_mode = #tpu.pipeline_mode<synchronous>, transform_indices = @transform_1, window_bounds = array<i64: 4, 128>}, {pipeline_mode = #tpu.pipeline_mode<synchronous>, transform_indices = @transform_2, window_bounds = array<i64: 1, 128>}, {pipeline_mode = #tpu.pipeline_mode<synchronous>, transform_indices = @transform_3, window_bounds = array<i64: 2, 128>}, {pipeline_mode = #tpu.pipeline_mode<synchronous>, transform_indices = @transform_4, window_bounds = array<i64: 2, 1>}, {transform_indices = @transform_5, window_bounds = array<i64: 2, 8>}]} {
    %c0 = arith.constant 0 : index
    %c0_0 = arith.constant 0 : index
    %0 = vector.load %arg1[%c0, %c0_0] : memref<8x4xf32, #tpu.memory_space<vmem>>, vector<8x4xf32>
    %c0_1 = arith.constant 0 : index
    %c0_2 = arith.constant 0 : index
    %1 = vector.load %arg2[%c0_1, %c0_2] : memref<4x128xf32, #tpu.memory_space<vmem>>, vector<4x128xf32>
    %cst = arith.constant dense<0.000000e+00> : vector<8x128xf32>
    %2 = tpu.matmul %0, %1, %cst {dimension_numbers = #tpu.dot_dimension_numbers<[1], [0], [0], [1], [0, 0, 1, 1], [], []>} : vector<8x4xf32>, vector<4x128xf32>, vector<8x128xf32> -> vector<8x128xf32>
    %c0_3 = arith.constant 0 : index
    %c0_4 = arith.constant 0 : index
    %3 = vector.load %arg3[%c0_3, %c0_4] : memref<1x128xf32, #tpu.memory_space<vmem>>, vector<1x128xf32>
    %4 = vector.broadcast %3 : vector<1x128xf32> to vector<8x128xf32>
    %5 = arith.addf %2, %4 : vector<8x128xf32>
    %cst_5 = arith.constant 0.000000e+00 : f32
    %6 = vector.broadcast %cst_5 : f32 to vector<8x128xf32>
    %7 = arith.maximumf %5, %6 : vector<8x128xf32>
    %8 = tpu.transpose %7, [1, 0] : vector<8x128xf32> -> vector<128x8xf32>
    %c0_6 = arith.constant 0 : index
    %c0_7 = arith.constant 0 : index
    %9 = vector.load %arg4[%c0_6, %c0_7] : memref<2x128xf32, #tpu.memory_space<vmem>>, vector<2x128xf32>
    %cst_8 = arith.constant dense<0.000000e+00> : vector<2x8xf32>
    %10 = tpu.matmul %9, %8, %cst_8 {dimension_numbers = #tpu.dot_dimension_numbers<[1], [0], [0], [1], [0, 0, 1, 1], [], []>} : vector<2x128xf32>, vector<128x8xf32>, vector<2x8xf32> -> vector<2x8xf32>
    %c0_9 = arith.constant 0 : index
    %c0_10 = arith.constant 0 : index
    %11 = vector.load %arg5[%c0_9, %c0_10] : memref<2x1xf32, #tpu.memory_space<vmem>>, vector<2x1xf32>
    %12 = vector.broadcast %11 : vector<2x1xf32> to vector<2x8xf32>
    %13 = arith.addf %10, %12 : vector<2x8xf32>
    %c0_11 = arith.constant 0 : index
    %c0_12 = arith.constant 0 : index
    %14 = vector.load %arg6[%c0_11, %c0_12] : memref<2x8xf32, #tpu.memory_space<vmem>>, vector<2x8xf32>
    tpu.vector_store %arg6[%c0_11, %c0_12], %13 {strides = array<i32>} : memref<2x8xf32, #tpu.memory_space<vmem>>, vector<2x8xf32>,
    return
  }
  func.func @transform_0(%arg0: i32) -> (i32, i32) {
    %c0_i32 = arith.constant 0 : i32
    %c0_i32_0 = arith.constant 0 : i32
    return %arg0, %c0_i32 : i32, i32
  }
  func.func @transform_1(%arg0: i32) -> (i32, i32) {
    %c0_i32 = arith.constant 0 : i32
    %c0_i32_0 = arith.constant 0 : i32
    %c0_i32_1 = arith.constant 0 : i32
    return %c0_i32, %c0_i32_0 : i32, i32
  }
  func.func @transform_2(%arg0: i32) -> (i32, i32) {
    %c0_i32 = arith.constant 0 : i32
    %c0_i32_0 = arith.constant 0 : i32
    %c0_i32_1 = arith.constant 0 : i32
    return %c0_i32, %c0_i32_0 : i32, i32
  }
  func.func @transform_3(%arg0: i32) -> (i32, i32) {
    %c0_i32 = arith.constant 0 : i32
    %c0_i32_0 = arith.constant 0 : i32
    %c0_i32_1 = arith.constant 0 : i32
    return %c0_i32, %c0_i32_0 : i32, i32
  }
  func.func @transform_4(%arg0: i32) -> (i32, i32) {
    %c0_i32 = arith.constant 0 : i32
    %c0_i32_0 = arith.constant 0 : i32
    %c0_i32_1 = arith.constant 0 : i32
    return %c0_i32, %c0_i32_0 : i32, i32
  }
  func.func @transform_5(%arg0: i32) -> (i32, i32) {
    %c0_i32 = arith.constant 0 : i32
    %c0_i32_0 = arith.constant 0 : i32
    return %c0_i32, %arg0 : i32, i32
  }
}

</mosaic_0001>

<bundles_post_ra>
// kernel: tpu_custom_call.1
= control target key start
LH: loop header
LB: loop body
LE: loop exit
PB: predicated region body
PF: predicated region fallthrough
CT: control target
= control target key end

     0   :  { %vm34_vm0 = vcmask 1043456   ;;  %v246_v2 = vmov 0.0   ;;  %vm247_vm1 = vmmov 0   ;;  %vm30_vm2 = vcmask 31744   ;;  %s298_s0 = inlined_call_operand.vmem [shape: f32[8,4], index: 0, kind: input, shape index: {}]   ;;  %s299_s1 = inlined_call_operand.vmem [shape: f32[4,128], index: 1, kind: input, shape index: {}]   ;;  %s300_s2 = inlined_call_operand.vmem [shape: f32[1,128], index: 2, kind: input, shape index: {}]   ;;  %s301_s3 = inlined_call_operand.vmem [shape: f32[2,128], index: 3, kind: input, shape index: {}]   ;;  %s302_s4 = inlined_call_operand.vmem [shape: f32[2,1], index: 4, kind: input, shape index: {}]   ;;  %s303_s5 = inlined_call_operand.hbm [shape: f32[2,8], index: 5, kind: output, shape index: {}]  }
   0x1   :  { %v22_v0 = vld [vmem:[%s299_s1] sm:$0xf]  ;;  %209 = vmatprep.subr.mxu0 %v246_v2  ;;  %211 = vmatprep.mubr.msk.f32.mxu0 %vm247_vm1, %v246_v2 }
   0x2   :  { %v21_v1 = vld [vmem:[%s298_s0] sm:$0xff] }
   0x3   :  { %10 = vsyncpa [#allocation3], 0  ;;  %210 = vmatpush3.msk.msra.mxu0 %vm34_vm0, %v22_v0  ;;  %214 = vmatprep.subr.mxu1 %v246_v2  ;;  %v110_v3 = vld [vmem:[%s302_s4] sm:$0x3]  ;;  %v248_v4 = vmov 0   ;;  %s249_s26 = smov [#allocation2]  }
   0x4   :  { %212 = vmatmul.mubr.msk.f32.vlgmr.msra.gmra.mxu0 %vm30_vm2, %v21_v1  ;;  %216 = vmatprep.mubr.msk.f32.mxu1 %vm247_vm1, %v246_v2  ;;  %v202_v5 = vld [vmem:[%s300_s2] ss:$0 sm:$0xff]  ;;  %s194_s4 = sshll.u32 %s249_s26, 4  ;;  %vm186_vm3 = vcmask 58368   ;;  %s195_s4 = int_to_ptr.vmem [resolvable:$true] %s194_s4 }
   0x5   :  { %223 = vset.pattern.permute.xlu0 %v248_v4  ;;  %v109_v10 = vld [vmem:[%s301_s3] sm:$0x3]  ;;  %s224_s2 = scalar_lea.vmem %s195_s4, 32  ;;  %p229_p1 = scmp.lt.s32.totalorder %s195_s4, %s195_s4 }
   0x6   :  { %113 = vperm.xlu0 %223, %v110_v3   ;;  %p225_p0 = scmp.ne.s32.totalorder %s195_s4, %s224_s2  ;;  %p230_p2 = scmp.lt.s32.totalorder %s224_s2, %s224_s2 }
   0x8   :  { %p231_p3 = por %p230_p2, %p229_p1 }
   0xa   :  { %p232_p4 = pnand %p231_p3, %p225_p0 }
  0x81   :  { %v114_v11 = vpop.permute.xlu0 %113 }
  0xc4   :  { %v104_v6 = vpop.f32.mrf.mxu0 }
  0xc5   :  { %v105_v7 = vadd.f32 %v202_v5, %v104_v6 }
  0xc6   :  { %v213_v8 = vpop.f32.mrf.mxu0 }
  0xc7   :  { %v108_v9 = vmax.f32 %v105_v7, 0.0 }
  0xc9   :  { %215 = vmatpush3.xpose.msra.mxu1 %v108_v9 }
  0xcc   :  { %217 = vmatmul.mubr.f32.vlgmr.msra.gmra.mxu1 %v109_v10 }
 0x18c   :  { %v182_v12 = vpop.f32.mrf.mxu1 }
 0x18d   :  { %v183_v13 = vadd.f32 %v182_v12, %v114_v11 }
 0x18e   :  { %v218_v14 = vpop.f32.mrf.mxu1 }
 0x18f   :  { %187 = vst.msk [vmem:[#allocation2] sm:$0x3] %vm186_vm3, %v183_v13 }
 0x190   :  { %235 = shalt.err (!%p232_p4)
}
 0x191   :  { %197 = dma.vmem_to_hbm [thread:$0]  %s195_s4, 32, %s303_s5, [#allocation3]  }
 0x192   :  { %244 = dma.done.wait [#allocation3], 32  }
 0x193   :  { %245 = vsyncadd [#allocation3], 4294967264 }
 0x194   :  { %201 = vsyncpa [#allocation3], 1 }

</bundles_post_ra>
